<compile_context>
chip_gen: v6e
topology: v6e:2x2x1
jax: 0.10.0
libtpu: 0.0.40
codegen_flags: <defaults>
</compile_context>

<pallas_src>
import functools
import math

import jax
import jax.numpy as jnp
from jax.experimental import pallas as pl
from jax.experimental.pallas import tpu as pltpu
from jax.scipy.special import erf as _erf_exact


# Scoped VMEM budget with headroom (fits v5e/v6e 128 MiB and v7x 64 MiB physical VMEM).
_VMEM_LIMIT_BYTES = 64 * 1024 * 1024


# ----------------------------------------------------------------------------- helpers

def _round_up(x, m):
    return ((x + m - 1) // m) * m


def _choose_row_tile(rows, row_tile):
    """Pick a row tile: as large as requested (256-512 recommended), multiple of 8,
    and keep the row grid >= 2 steps when possible (megacore / v7x 2-TC sharding)."""
    rt = min(row_tile, _round_up(rows, 8))
    if pl.cdiv(rows, rt) < 2 and rt > 8:
        half = _round_up(rt // 2, 8)
        if pl.cdiv(rows, half) >= 2:
            rt = half
    return rt


def _pad_rows(x2, rows_p):
    rows = x2.shape[0]
    if rows_p == rows:
        return x2
    return jnp.pad(x2, ((0, rows_p - rows), (0, 0)))


_SQRT_HALF = 0.7071067811865476


def _erf_f32(x):
    # Abramowitz & Stegun 7.1.26 rational approximation, |err| <= 1.5e-7 (f32-level
    # accuracy). Uses only exp/abs/select so it lowers cleanly inside the kernel.
    a1, a2, a3, a4, a5 = (0.254829592, -0.284496736, 1.421413741,
                          -1.453152027, 1.061405429)
    p = 0.3275911
    ax = jnp.abs(x)
    t = 1.0 / (1.0 + p * ax)
    poly = ((((a5 * t + a4) * t + a3) * t + a2) * t + a1) * t
    y = 1.0 - poly * jnp.exp(-ax * ax)
    return jnp.where(x >= 0, y, -y)


def _gelu_f32(x):
    # exact-erf GELU (matches the PyTorch module's gelu) to float32 accuracy
    return 0.5 * x * (1.0 + _erf_f32(x * _SQRT_HALF))


# ----------------------------------------------------------------------------- kernel 1: linear (+ optional GELU)

def _linear_kernel(x_ref, w_ref, b_ref, o_ref, *, activation):
    # Native-dtype operands straight to the MXU; accumulate in f32.
    h = jnp.dot(x_ref[...], w_ref[...], preferred_element_type=jnp.float32)
    h = h + b_ref[...].astype(jnp.float32)
    if activation == "gelu":
        h = _gelu_f32(h)
    o_ref[...] = h.astype(o_ref.dtype)


def linear(x2, w_t, bias, *, activation="none", row_tile=256, out_dtype=None):
    """x2: (rows, K). w_t: (K, N) (in -> out). bias: (N,). Returns (rows, N)."""
    rows, K = x2.shape
    K2, N = w_t.shape
    assert K == K2
    out_dtype = out_dtype or x2.dtype

    rt = _choose_row_tile(rows, row_tile)
    rows_p = _round_up(rows, rt)
    xp = _pad_rows(x2, rows_p)
    b2 = bias.reshape(1, N)
    grid = rows_p // rt

    itemsize = jnp.dtype(x2.dtype).itemsize
    cost = pl.CostEstimate(
        flops=2 * rows_p * K * N,
        transcendentals=(rows_p * N if activation == "gelu" else 0),
        bytes_accessed=(rows_p * K + K * N + N + rows_p * N) * itemsize,
    )

    out = pl.pallas_call(
        functools.partial(_linear_kernel, activation=activation),
        out_shape=jax.ShapeDtypeStruct((rows_p, N), out_dtype),
        grid_spec=pltpu.PrefetchScalarGridSpec(
            num_scalar_prefetch=0,
            grid=(grid,),
            in_specs=[
                pl.BlockSpec((rt, K), lambda i: (i, 0)),   # activations tile
                # TODO(synk): for K/N beyond ~2-4K, add a K/N grid axis with a
                # pl.when-initialized accumulator instead of one resident (K,N) block.
                pl.BlockSpec((K, N), lambda i: (0, 0)),    # weight (constant index -> resident)
                pl.BlockSpec((1, N), lambda i: (0, 0)),    # bias
            ],
            out_specs=pl.BlockSpec((rt, N), lambda i: (i, 0)),
        ),
        compiler_params=pltpu.CompilerParams(
            dimension_semantics=("parallel",),
            vmem_limit_bytes=_VMEM_LIMIT_BYTES),
        cost_estimate=cost,
    )(xp, w_t, b2)
    return out[:rows]


# ----------------------------------------------------------------------------- kernel 2: attention core

def _attention_kernel(q_ref, k_ref, v_ref, mask_ref, o_ref, *, scale):
    q = q_ref[...]                                   # (1, S, d)
    k = k_ref[...]
    v = v_ref[...]
    s = jnp.einsum("bqd,bkd->bqk", q, k,
                   preferred_element_type=jnp.float32) * scale
    s = s + mask_ref[...].astype(jnp.float32)        # additive mask (1, 1, S)
    s = s - jnp.max(s, axis=-1, keepdims=True)
    p = jnp.exp(s)
    p = p / jnp.sum(p, axis=-1, keepdims=True)
    # TODO(synk): attention-probs dropout and head_mask not implemented (eval semantics).
    ctx = jnp.einsum("bqk,bkd->bqd", p.astype(v.dtype), v,
                     preferred_element_type=jnp.float32)
    o_ref[...] = ctx.astype(o_ref.dtype)


def multi_head_attention(q, k, v, add_mask):
    """q, k, v: (B, nH, S, d). add_mask: (B, 1, 1, S) additive. Returns (B, nH, S, d)."""
    B, nH, S, d = q.shape
    BH = B * nH
    qf = q.reshape(BH, S, d)
    kf = k.reshape(BH, S, d)
    vf = v.reshape(BH, S, d)
    mf = jnp.broadcast_to(add_mask, (B, nH, 1, S)).reshape(BH, 1, S)
    scale = 1.0 / math.sqrt(d)

    itemsize = jnp.dtype(q.dtype).itemsize
    cost = pl.CostEstimate(
        flops=4 * BH * S * S * d,
        transcendentals=BH * S * S,
        bytes_accessed=(4 * BH * S * d + BH * S) * itemsize,
    )

    out = pl.pallas_call(
        functools.partial(_attention_kernel, scale=scale),
        out_shape=jax.ShapeDtypeStruct((BH, S, d), q.dtype),
        grid_spec=pltpu.PrefetchScalarGridSpec(
            num_scalar_prefetch=0,
            grid=(BH,),
            in_specs=[
                pl.BlockSpec((1, S, d), lambda i: (i, 0, 0)),
                pl.BlockSpec((1, S, d), lambda i: (i, 0, 0)),
                pl.BlockSpec((1, S, d), lambda i: (i, 0, 0)),
                pl.BlockSpec((1, 1, S), lambda i: (i, 0, 0)),
            ],
            out_specs=pl.BlockSpec((1, S, d), lambda i: (i, 0, 0)),
        ),
        compiler_params=pltpu.CompilerParams(
            dimension_semantics=("parallel",),
            vmem_limit_bytes=_VMEM_LIMIT_BYTES),
        cost_estimate=cost,
    )(qf, kf, vf, mf)
    return out.reshape(B, nH, S, d)


# ----------------------------------------------------------------------------- kernel 3: dense + residual + LayerNorm

def _dense_residual_ln_kernel(x_ref, res_ref, w_ref, b_ref, g_ref, beta_ref,
                              o_ref, *, eps):
    h = jnp.dot(x_ref[...], w_ref[...], preferred_element_type=jnp.float32)
    h = h + b_ref[...].astype(jnp.float32)
    # TODO(synk): training-mode dropout not implemented (inference: identity).
    y = h + res_ref[...].astype(jnp.float32)
    mean = jnp.mean(y, axis=-1, keepdims=True)
    var = jnp.mean(jnp.square(y - mean), axis=-1, keepdims=True)
    y = (y - mean) * jax.lax.rsqrt(var + eps)
    y = y * g_ref[...].astype(jnp.float32) + beta_ref[...].astype(jnp.float32)
    o_ref[...] = y.astype(o_ref.dtype)


def dense_residual_layernorm(x2, res2, w_t, bias, gamma, beta, *,
                             eps=1e-12, row_tile=256):
    """x2: (rows, K). res2: (rows, N). w_t: (K, N). Returns (rows, N)."""
    rows, K = x2.shape
    K2, N = w_t.shape
    assert K == K2 and res2.shape == (rows, N)

    rt = _choose_row_tile(rows, row_tile)
    rows_p = _round_up(rows, rt)
    xp = _pad_rows(x2, rows_p)
    rp = _pad_rows(res2, rows_p)
    b2 = bias.reshape(1, N)
    g2 = gamma.reshape(1, N)
    be2 = beta.reshape(1, N)
    grid = rows_p // rt

    itemsize = jnp.dtype(x2.dtype).itemsize
    cost = pl.CostEstimate(
        flops=2 * rows_p * K * N + 8 * rows_p * N,
        transcendentals=rows_p,     # rsqrt per row
        bytes_accessed=(rows_p * K + K * N + 3 * N + 2 * rows_p * N) * itemsize,
    )

    out = pl.pallas_call(
        functools.partial(_dense_residual_ln_kernel, eps=eps),
        out_shape=jax.ShapeDtypeStruct((rows_p, N), res2.dtype),
        grid_spec=pltpu.PrefetchScalarGridSpec(
            num_scalar_prefetch=0,
            grid=(grid,),
            in_specs=[
                pl.BlockSpec((rt, K), lambda i: (i, 0)),   # activations tile
                pl.BlockSpec((rt, N), lambda i: (i, 0)),   # residual tile
                pl.BlockSpec((K, N), lambda i: (0, 0)),    # weight (resident)
                pl.BlockSpec((1, N), lambda i: (0, 0)),    # bias
                pl.BlockSpec((1, N), lambda i: (0, 0)),    # LN gamma
                pl.BlockSpec((1, N), lambda i: (0, 0)),    # LN beta
            ],
            out_specs=pl.BlockSpec((rt, N), lambda i: (i, 0)),
        ),
        compiler_params=pltpu.CompilerParams(
            dimension_semantics=("parallel",),
            vmem_limit_bytes=_VMEM_LIMIT_BYTES),
        cost_estimate=cost,
    )(xp, rp, w_t, b2, g2, be2)
    return out[:rows]


# ----------------------------------------------------------------------------- BertLayer / BertEncoder forward

def bert_layer_forward(hidden, attn_mask, p, *, eps=1e-12, row_tile=256):
    """hidden: (B, S, H). attn_mask: (B, 1, 1, S) additive. Returns (B, S, H)."""
    B, S, H = hidden.shape
    nH = p["num_heads"]
    d = H // nH
    rows = B * S
    x2 = hidden.reshape(rows, H)

    # --- self attention: fused QKV projection + per-head attention ---
    qkv = linear(x2, p["w_qkv"], p["b_qkv"], row_tile=row_tile)        # (rows, 3H)
    qkv = qkv.reshape(B, S, 3, nH, d)
    q = jnp.transpose(qkv[:, :, 0], (0, 2, 1, 3))                      # (B, nH, S, d)
    k = jnp.transpose(qkv[:, :, 1], (0, 2, 1, 3))
    v = jnp.transpose(qkv[:, :, 2], (0, 2, 1, 3))
    ctx = multi_head_attention(q, k, v, attn_mask)                     # (B, nH, S, d)
    ctx2 = jnp.transpose(ctx, (0, 2, 1, 3)).reshape(rows, H)

    # --- BertSelfOutput: dense + residual + LayerNorm ---
    attn_out = dense_residual_layernorm(ctx2, x2, p["w_ao"], p["b_ao"],
                                        p["ln1_g"], p["ln1_b"],
                                        eps=eps, row_tile=row_tile)

    # --- BertIntermediate: dense + GELU ---
    inter = linear(attn_out, p["w_i"], p["b_i"], activation="gelu",
                   row_tile=row_tile)                                  # (rows, I)

    # --- BertOutput: dense + residual + LayerNorm ---
    layer_out = dense_residual_layernorm(inter, attn_out, p["w_o"], p["b_o"],
                                         p["ln2_g"], p["ln2_b"],
                                         eps=eps, row_tile=row_tile)
    return layer_out.reshape(B, S, H)


def bert_encoder_forward(hidden, attn_mask, layer_params, *, eps=1e-12, row_tile=256):
    # TODO(synk): output_attentions / output_hidden_states tuple aggregation omitted;
    #             returns the final hidden states (both flags False).
    for p in layer_params:
        hidden = bert_layer_forward(hidden, attn_mask, p, eps=eps, row_tile=row_tile)
    return hidden


# ----------------------------------------------------------------------------- params + reference

def init_bert_params(key, *, num_layers, hidden, intermediate, num_heads,
                     dtype=jnp.float32):
    def lin_w(kk, fan_in, fan_out):
        # nn.Linear stores (out, in); transpose once here to (in, out).
        w = jax.random.normal(kk, (fan_out, fan_in), dtype) * (1.0 / math.sqrt(fan_in))
        return w.T

    layers = []
    for _ in range(num_layers):
        ks = jax.random.split(key, 13)
        key, ks = ks[0], ks[1:]
        wq = lin_w(ks[0], hidden, hidden)
        wk = lin_w(ks[1], hidden, hidden)
        wv = lin_w(ks[2], hidden, hidden)
        bq = jax.random.normal(ks[3], (hidden,), dtype) * 0.01
        bk = jax.random.normal(ks[4], (hidden,), dtype) * 0.01
        bv = jax.random.normal(ks[5], (hidden,), dtype) * 0.01
        layers.append(dict(
            num_heads=num_heads,
            w_qkv=jnp.concatenate([wq, wk, wv], axis=1),
            b_qkv=jnp.concatenate([bq, bk, bv]),
            w_ao=lin_w(ks[6], hidden, hidden),
            b_ao=jax.random.normal(ks[7], (hidden,), dtype) * 0.01,
            ln1_g=jnp.ones((hidden,), dtype),
            ln1_b=jnp.zeros((hidden,), dtype),
            w_i=lin_w(ks[8], hidden, intermediate),
            b_i=jax.random.normal(ks[9], (intermediate,), dtype) * 0.01,
            w_o=lin_w(ks[10], intermediate, hidden),
            b_o=jax.random.normal(ks[11], (hidden,), dtype) * 0.01,
            ln2_g=jnp.ones((hidden,), dtype),
            ln2_b=jnp.zeros((hidden,), dtype),
        ))
    return layers


def _reference_encoder(hidden, attn_mask, layer_params, *, eps=1e-12):
    prec = jax.lax.Precision.HIGHEST

    def gelu(x):
        return 0.5 * x * (1.0 + _erf_exact(x * _SQRT_HALF))

    def layer_norm(y, g, b):
        mean = jnp.mean(y, axis=-1, keepdims=True)
        var = jnp.mean(jnp.square(y - mean), axis=-1, keepdims=True)
        return (y - mean) * jax.lax.rsqrt(var + eps) * g + b

    h = hidden
    for p in layer_params:
        B, S, H = h.shape
        nH = p["num_heads"]
        d = H // nH
        qkv = jnp.einsum("bsh,hk->bsk", h, p["w_qkv"], precision=prec) + p["b_qkv"]
        qkv = qkv.reshape(B, S, 3, nH, d)
        q = jnp.transpose(qkv[:, :, 0], (0, 2, 1, 3))
        k = jnp.transpose(qkv[:, :, 1], (0, 2, 1, 3))
        v = jnp.transpose(qkv[:, :, 2], (0, 2, 1, 3))
        s = jnp.einsum("bhqd,bhkd->bhqk", q, k, precision=prec) / math.sqrt(d)
        s = s + attn_mask
        probs = jax.nn.softmax(s, axis=-1)
        ctx = jnp.einsum("bhqk,bhkd->bhqd", probs, v, precision=prec)
        ctx = jnp.transpose(ctx, (0, 2, 1, 3)).reshape(B, S, H)
        ao = jnp.einsum("bsh,hk->bsk", ctx, p["w_ao"], precision=prec) + p["b_ao"]
        ao = layer_norm(ao + h, p["ln1_g"], p["ln1_b"])
        it = gelu(jnp.einsum("bsh,hk->bsk", ao, p["w_i"], precision=prec) + p["b_i"])
        out = jnp.einsum("bsk,kh->bsh", it, p["w_o"], precision=prec) + p["b_o"]
        h = layer_norm(out + ao, p["ln2_g"], p["ln2_b"])
    return h


# ----------------------------------------------------------------------------- main

if __name__ == "__main__":
    B, S, H, I, NH, L = 2, 8, 32, 64, 4, 2
    eps = 1e-12

    key = jax.random.PRNGKey(0)
    kx, kp = jax.random.split(key, 2)

    hidden = jax.random.normal(kx, (B, S, H), dtype=jnp.float32)
    # additive attention mask: batch 0 fully valid, batch 1 has 6 valid tokens
    valid = jnp.array([[1.0] * S, [1.0] * 6 + [0.0] * (S - 6)], dtype=jnp.float32)
    attn_mask = (1.0 - valid)[:, None, None, :] * -10000.0            # (B, 1, 1, S)

    params = init_bert_params(kp, num_layers=L, hidden=H, intermediate=I,
                              num_heads=NH)

    out = bert_encoder_forward(hidden, attn_mask, params, eps=eps, row_tile=256)
    out = jax.block_until_ready(out)

    ref = _reference_encoder(hidden, attn_mask, params, eps=eps)
    assert out.shape == (B, S, H)
    max_err = float(jnp.max(jnp.abs(out - ref)))
    assert jnp.allclose(out, ref, atol=1e-4, rtol=1e-4), \
        f"mismatch vs reference, max abs err {max_err}"

    print("KERNEL_OK")
</pallas_src>

<mosaic_0001>
module attributes {stable_mosaic.version = 11 : i64} {
  func.func @_linear_kernel(%arg0: i32, %arg1: memref<8x32xf32, #tpu.memory_space<vmem>>, %arg2: memref<32x96xf32, #tpu.memory_space<vmem>>, %arg3: memref<1x96xf32, #tpu.memory_space<vmem>>, %arg4: memref<8x96xf32, #tpu.memory_space<vmem>>) attributes {dimension_semantics = [#tpu.dimension_semantics<parallel>], iteration_bounds = array<i64: 2>, scalar_prefetch = 0 : i64, scratch_operands = 0 : i64, tpu.core_type = #tpu.core_type<tc>, window_params = [{transform_indices = @transform_0, window_bounds = array<i64: 8, 32>}, {pipeline_mode = #tpu.pipeline_mode<synchronous>, transform_indices = @transform_1, window_bounds = array<i64: 32, 96>}, {pipeline_mode = #tpu.pipeline_mode<synchronous>, transform_indices = @transform_2, window_bounds = array<i64: 1, 96>}, {transform_indices = @transform_3, window_bounds = array<i64: 8, 96>}]} {
    %c0 = arith.constant 0 : index
    %c0_0 = arith.constant 0 : index
    %0 = vector.load %arg1[%c0, %c0_0] : memref<8x32xf32, #tpu.memory_space<vmem>>, vector<8x32xf32>
    %c0_1 = arith.constant 0 : index
    %c0_2 = arith.constant 0 : index
    %1 = vector.load %arg2[%c0_1, %c0_2] : memref<32x96xf32, #tpu.memory_space<vmem>>, vector<32x96xf32>
    %cst = arith.constant dense<0.000000e+00> : vector<8x96xf32>
    %2 = tpu.matmul %0, %1, %cst {dimension_numbers = #tpu.dot_dimension_numbers<[1], [0], [0], [1], [0, 0, 1, 1], [], []>} : vector<8x32xf32>, vector<32x96xf32>, vector<8x96xf32> -> vector<8x96xf32>
    %c0_3 = arith.constant 0 : index
    %c0_4 = arith.constant 0 : index
    %3 = vector.load %arg3[%c0_3, %c0_4] : memref<1x96xf32, #tpu.memory_space<vmem>>, vector<1x96xf32>
    %4 = vector.broadcast %3 : vector<1x96xf32> to vector<8x96xf32>
    %5 = arith.addf %2, %4 : vector<8x96xf32>
    %c0_5 = arith.constant 0 : index
    %c0_6 = arith.constant 0 : index
    %6 = vector.load %arg4[%c0_5, %c0_6] : memref<8x96xf32, #tpu.memory_space<vmem>>, vector<8x96xf32>
    tpu.vector_store %arg4[%c0_5, %c0_6], %5 {strides = array<i32>} : memref<8x96xf32, #tpu.memory_space<vmem>>, vector<8x96xf32>,
    return
  }
  func.func @transform_0(%arg0: i32) -> (i32, i32) {
    %c0_i32 = arith.constant 0 : i32
    %c0_i32_0 = arith.constant 0 : i32
    return %arg0, %c0_i32 : i32, i32
  }
  func.func @transform_1(%arg0: i32) -> (i32, i32) {
    %c0_i32 = arith.constant 0 : i32
    %c0_i32_0 = arith.constant 0 : i32
    %c0_i32_1 = arith.constant 0 : i32
    return %c0_i32, %c0_i32_0 : i32, i32
  }
  func.func @transform_2(%arg0: i32) -> (i32, i32) {
    %c0_i32 = arith.constant 0 : i32
    %c0_i32_0 = arith.constant 0 : i32
    %c0_i32_1 = arith.constant 0 : i32
    return %c0_i32, %c0_i32_0 : i32, i32
  }
  func.func @transform_3(%arg0: i32) -> (i32, i32) {
    %c0_i32 = arith.constant 0 : i32
    %c0_i32_0 = arith.constant 0 : i32
    return %arg0, %c0_i32 : i32, i32
  }
}

</mosaic_0001>

<bundles_post_ra>
// kernel: tpu_custom_call.1
= control target key start
LH: loop header
LB: loop body
LE: loop exit
PB: predicated region body
PF: predicated region fallthrough
CT: control target
= control target key end

     0   :  { %8 = vsyncpa [#allocation3], 0  ;;  %s790_s0 = inlined_call_operand.hbm [shape: f32[16,32], index: 0, kind: input, shape index: {}]   ;;  %s791_s1 = inlined_call_operand.hbm [shape: f32[32,96], index: 1, kind: input, shape index: {}]   ;;  %s792_s2 = inlined_call_operand.vmem [shape: f32[1,96], index: 2, kind: input, shape index: {}]   ;;  %s793_s3 = inlined_call_operand.hbm [shape: f32[16,96], index: 3, kind: output, shape index: {}]  }
   0x1   :  { %10 = vsyncpa [#allocation3 + $0x1], 0 }
   0x2   :  { %11 = vsyncpa [#allocation6], 0 }
   0x3   :  { %12 = vsyncpa [#allocation4], 0 }
   0x4   :  { %14 = vsyncpa [#allocation4 + $0x1], 0  ;;  %s627_s12 = smov 0   ;;  %s629_s13 = smov 0  }
   0x5   :  { %s631_s14 = smov 0   ;;  %s633_s15 = smov 0  }
   0x6 LB: > { %s648_s16 = sadd.s32 4294967295, %s598_s15   ;;  %s383_s17 = sadd.s32 4294967294, %s598_s15   ;;  %s598_s15 = sphi %s633_s15, %s815_s15   ;;  %s594_s14 = sphi %s631_s14, %s814_s14   ;;  %s590_s13 = sphi %s629_s13, %s813_s13   ;;  %s586_s12 = sphi %s627_s12, %s812_s12  }
   0x7   : > { %p40_p0 = scmp.ne.s32.totalorder %s590_s13, %s586_s12  ;;  %p794_p1 = scmp.eq.s32.totalorder %s648_s16, 0 }
   0x8   : > { %p112_p3 = scmp.eq.s32.totalorder %s383_s17, 1  ;;  %p384_p5 = scmp.ge.s32.totalorder %s598_s15, 1 }
   0x9   : > { %p657_p4 = por %p794_p1, %p40_p0  ;;  %p119_p7 = scmp.lt.s32.totalorder %s598_s15, 3 }
   0xa   : > { %p662_p6 = por %p112_p3, %p40_p0  ;;  %s600_s21 = smov [#allocation5]  }
   0xb   : > { %s798_s18 = scalar_select %p657_p4, 1, 0 }
   0xc   : > { %s799_s19 = scalar_select %p662_p6, 1, 0 }
   0xd   : > { %p667_p8 = pnand %p384_p5, %p119_p7  ;;  %s131_s22 = sshll.u32 %s600_s21, 4  ;;  %s132_s22 = int_to_ptr.vmem [resolvable:$true] %s131_s22 }
   0xe   : > { %s681_s24 = sadd.s32 1, %s598_s15   ;;  %s27_s25 = sadd.s32 1, %s594_s14 }
   0xf   : > { %s800_s20 = scalar_select %p667_p8, 1, 0 }
  0x10   : > { %p423_p9 = pneg %p667_p8  ;;  %s24_s26 = ssub.s32 %s598_s15, %s681_s24 }
  0x11   : > { %s487_s27 = scalar_lea.vmem %s132_s22, 512  ;;  %p495_p5 = scmp.lt.s32.totalorder %s132_s22, %s132_s22 }
  0x12   : > { %p676_p11 = pnand %p423_p9, %p794_p1  ;;  %p488_p13 = scmp.ne.s32.totalorder %s132_s22, %s487_s27 }
  0x13   : > { %p496_p7 = scmp.lt.s32.totalorder %s487_s27, %s487_s27 }
  0x14   : > { %p478_p12 = pneg %p676_p11 }
  0x15   : > { %p497_p10 = por %p496_p7, %p495_p5 }
  0x16   : > { %p490_p0 = pnand %p488_p13, %p478_p12 }
  0x18   : > { %p491_p3 = pneg %p490_p0 }
  0x1a   : > { %p498_p2 = pnand %p497_p10, %p491_p3 }
  0x1c   : > { %501 = shalt.err (!%p498_p2)
}
  0x1d   : > { %s601_s28 = smov 128   ;;  %s602_s29 = smov 8  }
  0x1e   : > { %426 = dma.hbm_to_vmem [thread:$0]  (!%p676_p11), %s791_s1, 512, %s132_s22, [#allocation6], %s601_s28, %s601_s28, %s602_s29  }
  0x1f   : > { %p25_p9 = scmp.eq.s32.totalorder %s24_s26, 0  ;;  %p34_p12 = scmp.ne.s32.totalorder %s594_s14, %s590_s13 }
  0x20   : > { %p35_p10 = scmp.eq.s32.totalorder %s598_s15, 0  ;;  %p436_p2 = scmp.lt.s32.totalorder %s598_s15, 2 }
  0x21   : > { %s698_s5 = scalar_select %p25_p9, %s594_s14, %s27_s25  }
  0x22   : > { %p36_p13 = por %p35_p10, %p34_p12  ;;  %p802_p0 = scmp.eq.s32.totalorder %s648_s16, 1 }
  0x23   : > { %s148_s7 = sand.u32 1, %s594_s14   ;;  %s388_s8 = sshll.u32 %s598_s15, 7 }
  0x24   : > { %p702_p3 = por %p802_p0, %p34_p12  ;;  %s387_s9 = sshll.u32 %s148_s7, 3 }
  0x25   : > { %s711_s17 = scalar_lea.hbm %s790_s0, %s388_s8  ;;  %s152_s21 = scalar_lea.vmem [#allocation2], %s387_s9 }
  0x26   : > { %s803_s6 = scalar_select %p702_p3, 1, 0 }
  0x27   : > { %s159_s22 = sshll.u32 %s152_s21, 4  ;;  %p713_p11 = pnand %p436_p2, %p36_p13  ;;  %s160_s22 = int_to_ptr.vmem [resolvable:$true] %s159_s22 }
  0x28   : > { %s149_s25 = scalar_lea.sflag [#allocation3], %s148_s7  ;;  %s502_s26 = scalar_lea.hbm %s711_s17, 128 }
  0x29   : > { %p503_p5 = scmp.ne.s32.totalorder %s711_s17, %s502_s26  ;;  %p504_p7 = pneg %p713_p11 }
  0x2a   : > { %s507_s29 = scalar_lea.hbm %s790_s0, 256  ;;  %p508_p10 = scmp.lt.s32.totalorder %s711_s17, %s790_s0 }
  0x2b   : > { %p505_p9 = pnand %p504_p7, %p503_p5  ;;  %p509_p2 = scmp.lt.s32.totalorder %s507_s29, %s502_s26 }
  0x2d   : > { %p506_p12 = pneg %p505_p9  ;;  %p510_p13 = por %p509_p2, %p508_p10 }
  0x2f   : > { %p511_p0 = pnand %p510_p13, %p506_p12 }
  0x31   : > { %514 = shalt.err (!%p511_p0)
}
  0x32   : > { %s515_s8 = scalar_lea.vmem %s160_s22, 128  ;;  %s603_s7 = smov [#allocation2]  }
  0x33   : > { %p516_p1 = scmp.ne.s32.totalorder %s160_s22, %s515_s8  ;;  %s520_s9 = sshll.u32 %s603_s7, 4  ;;  %s521_s9 = int_to_ptr.vmem [resolvable:$false] %s520_s9 }
  0x34   : > { %s522_s10 = scalar_lea.vmem %s521_s9, 256  ;;  %p523_p5 = scmp.lt.s32.totalorder %s160_s22, %s521_s9 }
  0x35   : > { %p518_p6 = pnand %p516_p1, %p504_p7  ;;  %p524_p9 = scmp.lt.s32.totalorder %s522_s10, %s515_s8 }
  0x37   : > { %p519_p3 = pneg %p518_p6  ;;  %p525_p4 = por %p524_p9, %p523_p5 }
  0x39   : > { %p526_p8 = pnand %p525_p4, %p519_p3 }
  0x3b   : > { %529 = shalt.err (!%p526_p8)
}
  0x3c   : > { %430 = dma.hbm_to_vmem [thread:$0]  (!%p713_p11), %s711_s17, 128, %s160_s22, %s149_s25  }
  0x3d   : > { %p805_p12 = scmp.ne.s32.totalorder %s800_s20, 0 }
  0x3e   : > { %s734_s11 = sand.u32 (!%p805_p12), 1, %s590_s13   ;;  %p806_p1 = scmp.ne.s32.totalorder (!%p805_p12), %s798_s18, 0 }
  0x3f   : > { %168 = sbr.rel (%p805_p12) target bundleno = 289 (0x121), region = 32  ;;  %s390_s21 = sshll.u32 (!%p805_p12), %s734_s11, 3 }
  0x40   : > { %s171_s26 = scalar_lea.sflag (!%p805_p12), [#allocation3], %s734_s11  ;;  %s174_s27 = scalar_lea.vmem (!%p805_p12), [#allocation2], %s390_s21 }
  0x44   : > { %573 = dma.done.wait (%p806_p1), %s171_s26, 128  }
  0x45   : > { %575 = vsyncadd (%p806_p1), %s171_s26, 4294967168  ;;  %p807_p4 = scmp.eq.s32.totalorder %s648_s16, 0 }
  0x47   : > { %577 = dma.done.wait (%p807_p4), [#allocation6], 512   ;;  %p808_p6 = pmov %p807_p4 }
  0x48   : > { %v604_v0 = vmov 0.0   ;;  %vm605_vm0 = vmmov 0   ;;  %v205_v1 = vld [vmem:[#allocation5 + $0x18] sm:$0xff]  ;;  %v204_v2 = vld [vmem:[#allocation5 + $0x10] sm:$0xff]  ;;  %v203_v3 = vld [vmem:[#allocation5 + $0x8] sm:$0xff]  ;;  %vm213_vm1 = vcmask 261120  }
  0x49   : > { %579 = vsyncadd (%p808_p6), [#allocation6], 4294966784  ;;  %404 = vmatprep.subr.mxu0 %v604_v0  ;;  %412 = vmatprep.mubr.msk.f32.mxu0 %vm605_vm0, %v604_v0  ;;  %v202_v4 = vld [vmem:[#allocation5] sm:$0xff]  ;;  %v201_v5 = vld [vmem:[%s174_s27] sm:$0xff]  ;;  %s396_s17 = sshll.u32 %s648_s16, 7  ;;  %s200_s22 = scalar_lea.vmem [#allocation7], %s390_s21 }
  0x4a   : > { %405 = vmatpush3.msra.mxu0 %v205_v1  ;;  %v393_v6 = vld [vmem:[%s792_s2] ss:$0 sm:$0xff]  ;;  %s303_s23 = sshll.u32 %s200_s22, 4  ;;  %vm287_vm2 = vcmask 785408   ;;  %s753_s29 = scalar_lea.hbm %s793_s3, %s396_s17  ;;  %s304_s23 = int_to_ptr.vmem [resolvable:$true] %s303_s23 }
  0x4b   : > { %406 = vmatprep.subr.mxu0 %v604_v0  ;;  %s290_s30 = scalar_lea.sflag [#allocation4], %s734_s11  ;;  %s530_s4 = scalar_lea.vmem %s304_s23, 128 }
  0x4c   : > { %407 = vmatpush3.msra.mxu0 %v204_v2  ;;  %p531_p8 = scmp.ne.s32.totalorder %s304_s23, %s530_s4  ;;  %p809_p3 = scmp.ne.s32.totalorder %s803_s6, 0 }
  0x4d   : > { %408 = vmatprep.subr.mxu0 %v604_v0  ;;  %s606_s16 = smov [#allocation7]  }
  0x4e   : > { %409 = vmatpush3.msra.mxu0 %v203_v3  ;;  %p532_p11 = pnand %p531_p8, %p809_p3  ;;  %s534_s8 = sshll.u32 %s606_s16, 4  ;;  %s535_s8 = int_to_ptr.vmem [resolvable:$false] %s534_s8 }
  0x4f   : > { %410 = vmatprep.subr.mxu0 %v604_v0  ;;  %s536_s7 = scalar_lea.vmem %s535_s8, 256  ;;  %p537_p10 = scmp.lt.s32.totalorder %s304_s23, %s535_s8 }
  0x50   : > { %411 = vmatpush3.msra.mxu0 %v202_v4  ;;  %p533_p7 = pneg %p532_p11  ;;  %p538_p2 = scmp.lt.s32.totalorder %s536_s7, %s530_s4 }
  0x51   : > { %413 = vmatmul.mubr.msk.f32.vlgmr.msra.gmra.mxu0 %vm213_vm1, %v201_v5 }
  0x52   : > { %p539_p13 = por %p538_p2, %p537_p10 }
  0x54   : > { %p540_p0 = pnand %p539_p13, %p533_p7 }
 0x111   : > { %v283_v7 = vpop.f32.mrf.mxu0 }
 0x112   : > { %v284_v8 = vadd.f32 %v393_v6, %v283_v7 }
 0x113   : > { %v414_v9 = vpop.f32.mrf.mxu0 }
 0x114   : > { %288 = vst.msk [vmem:[%s200_s22] sm:$0xff] %vm287_vm2, %v284_v8 }
 0x115   : > { %543 = shalt.err (!%p540_p0)
}
 0x116   : > { %s544_s9 = scalar_lea.hbm %s753_s29, 128  ;;  %s548_s21 = scalar_lea.hbm %s793_s3, 256 }
 0x117   : > { %p545_p5 = scmp.ne.s32.totalorder %s753_s29, %s544_s9  ;;  %p549_p1 = scmp.lt.s32.totalorder %s753_s29, %s793_s3 }
 0x118   : > { %p550_p4 = scmp.lt.s32.totalorder %s548_s21, %s544_s9 }
 0x119   : > { %p546_p9 = pnand %p545_p5, %p809_p3 }
 0x11a   : > { %p551_p6 = por %p550_p4, %p549_p1 }
 0x11b   : > { %p547_p12 = pneg %p546_p9 }
 0x11d   : > { %p552_p8 = pnand %p551_p6, %p547_p12 }
 0x11f   : > { %555 = shalt.err (!%p552_p8)
}
 0x120   : > { %421 = dma.vmem_to_hbm [thread:$0]  (%p809_p3), %s304_s23, 128, %s753_s29, %s290_s30  }
 0x121 PF: > { %s315_s18 = sand.u32 1, %s586_s12   ;;  %p810_p11 = scmp.ne.s32.totalorder %s799_s19, 0 }
 0x122   : > { %p811_p7 = scmp.ge.s32.totalorder %s598_s15, 2  ;;  %s316_s20 = scalar_lea.sflag [#allocation4], %s315_s18 }
 0x124   : > { %p432_p10 = pnand %p811_p7, %p810_p11 }
 0x126   : > { %p433_p2 = pneg %p432_p10 }
 0x128   : > { %581 = dma.done.wait (%p433_p2), %s316_s20, 128  }
 0x129   : > { %583 = vsyncadd (%p433_p2), %s316_s20, 4294967168  ;;  %p17_p13 = scmp.ge.s32.totalorder %s681_s24, 4   ;;  %s812_s12 = smov %s590_s13 }
 0x12a   : > { %s813_s13 = smov %s594_s14  ;;  %s814_s14 = smov %s698_s5 }
 0x12b   : > { %s815_s15 = smov %s681_s24  ;;  %19 = sbr.rel (!%p17_p13) target bundleno = 6 (0x6), region = 81 }
 0x130   :  { %321 = vsyncpa [#allocation3], 1 }
 0x131   :  { %323 = vsyncpa [#allocation3 + $0x1], 1 }
 0x132   :  { %324 = vsyncpa [#allocation6], 1 }
 0x133   :  { %325 = vsyncpa [#allocation4], 1 }
 0x134   :  { %327 = vsyncpa [#allocation4 + $0x1], 1 }

</bundles_post_ra>
